<compile_context>
chip_gen: v6e
topology: v6e:2x2x1
jax: 0.10.0
libtpu: 0.0.40
codegen_flags: <defaults>
</compile_context>

<pallas_src>
import jax
import jax.numpy as jnp
from jax import lax
from jax.experimental import pallas as pl
from jax.experimental.pallas import tpu as pltpu

KH = KW = 3
CIN = 3
COUT = 6
K_TAPS = KH * KW * CIN  # 27


def _make_conv_kernel(img_w: int, npix: int):
    """Build the per-batch-element conv kernel for an (img_h, img_w) image."""

    def kernel(x_ref, w_ref, b_ref, o_ref):
        # x_ref: (1, CIN, NPIX)    flattened pixels in the lane dimension
        # w_ref: (COUT, K_TAPS)    tap-major, channel-minor weight matrix
        # b_ref: (COUT, 1)         bias column
        # o_ref: (1, COUT, NPIX)   lane-dense output slab (cropped outside)
        xf = x_ref[0]  # (CIN, NPIX)

        # im2col via pure lane shifts: lane q of piece (kh, kw) holds pixel
        # q + kh*img_w + kw of each channel.  Wrap-around lanes only affect
        # invalid output pixels, which are cropped off in the wrapper.
        pieces = []
        for kh in range(KH):
            for kw in range(KW):
                d = kh * img_w + kw
                if d == 0:
                    pieces.append(xf)
                else:
                    pieces.append(pltpu.roll(xf, shift=npix - d, axis=1))
        patches = jnp.concatenate(pieces, axis=0)  # (K_TAPS, NPIX)

        # Single fused contraction over all 27 (kh, kw, cin) taps.
        acc = jnp.dot(
            w_ref[...], patches, preferred_element_type=jnp.float32
        )  # (COUT, NPIX)
        acc = acc + b_ref[...].astype(jnp.float32)
        o_ref[0] = acc.astype(o_ref.dtype)

    return kernel


def conv2d_pallas(x_nchw, weight, bias):
    """x_nchw: (N, CIN, H, W); weight: (COUT, CIN, KH, KW); bias: (COUT,)."""
    N, C, H, W = x_nchw.shape
    assert C == CIN
    Ho, Wo = H - KH + 1, W - KW + 1
    npix = H * W

    # Free (row-major) reshape: pixels -> lanes.  No HBM transpose.
    x_flat = x_nchw.reshape(N, CIN, npix)
    # Single small 2D weight tile, tap-major / channel-minor, matching the
    # patch row order built inside the kernel.
    w_mat = jnp.transpose(weight, (0, 2, 3, 1)).reshape(COUT, K_TAPS)
    b_col = bias.reshape(COUT, 1)

    out_flat = pl.pallas_call(
        _make_conv_kernel(W, npix),
        out_shape=jax.ShapeDtypeStruct((N, COUT, npix), x_nchw.dtype),
        grid_spec=pltpu.PrefetchScalarGridSpec(
            num_scalar_prefetch=0,
            grid=(N,),
            in_specs=[
                pl.BlockSpec((1, CIN, npix), lambda n: (n, 0, 0)),
                pl.BlockSpec((COUT, K_TAPS), lambda n: (0, 0)),
                pl.BlockSpec((COUT, 1), lambda n: (0, 0)),
            ],
            out_specs=pl.BlockSpec((1, COUT, npix), lambda n: (n, 0, 0)),
        ),
        compiler_params=pltpu.CompilerParams(
            dimension_semantics=("parallel",),
        ),
    )(x_flat, w_mat, b_col)

    # Free reshape back onto the (H, W) grid, then crop the valid window.
    # TODO(synk): for large H*W, tile H per grid step with a KH-1 halo (and add
    # a second parallel grid axis for v7x) instead of the full-spatial block.
    return out_flat.reshape(N, COUT, H, W)[:, :, :Ho, :Wo]


if __name__ == "__main__":
    key = jax.random.PRNGKey(0)
    kx, kw, kb = jax.random.split(key, 3)

    # PyTorch-shaped inputs/params: batch=2, in_channels=3, 16x16 image.
    x = jax.random.normal(kx, (2, CIN, 16, 16), dtype=jnp.float32)
    fan_in = CIN * KH * KW
    bound = 1.0 / (fan_in ** 0.5)
    weight = jax.random.uniform(
        kw, (COUT, CIN, KH, KW), minval=-bound, maxval=bound, dtype=jnp.float32
    )
    bias = jax.random.uniform(
        kb, (COUT,), minval=-bound, maxval=bound, dtype=jnp.float32
    )

    out = conv2d_pallas(x, weight, bias)
    out = jax.block_until_ready(out)

    # Reference: XLA conv with the same semantics as torch Conv2d (valid pad).
    ref = lax.conv_general_dilated(
        x, weight, window_strides=(1, 1), padding="VALID",
        dimension_numbers=("NCHW", "OIHW", "NCHW"),
    ) + bias[None, :, None, None]
    assert out.shape == (2, COUT, 14, 14)
    assert jnp.allclose(out, ref, atol=1e-4, rtol=1e-4)

    print("KERNEL_OK")
</pallas_src>

<mosaic_0001>
module attributes {stable_mosaic.version = 11 : i64} {
  func.func @kernel(%arg0: i32, %arg1: memref<1x3x256xf32, #tpu.memory_space<vmem>>, %arg2: memref<6x27xf32, #tpu.memory_space<vmem>>, %arg3: memref<6x1xf32, #tpu.memory_space<vmem>>, %arg4: memref<1x6x256xf32, #tpu.memory_space<vmem>>) attributes {dimension_semantics = [#tpu.dimension_semantics<parallel>], iteration_bounds = array<i64: 2>, scalar_prefetch = 0 : i64, scratch_operands = 0 : i64, tpu.core_type = #tpu.core_type<tc>, window_params = [{transform_indices = @transform_0, window_bounds = array<i64: 1, 3, 256>}, {pipeline_mode = #tpu.pipeline_mode<synchronous>, transform_indices = @transform_1, window_bounds = array<i64: 6, 27>}, {pipeline_mode = #tpu.pipeline_mode<synchronous>, transform_indices = @transform_2, window_bounds = array<i64: 6, 1>}, {transform_indices = @transform_3, window_bounds = array<i64: 1, 6, 256>}]} {
    %c0 = arith.constant 0 : index
    %c0_0 = arith.constant 0 : index
    %c0_1 = arith.constant 0 : index
    %0 = vector.load %arg1[%c0, %c0_0, %c0_1] : memref<1x3x256xf32, #tpu.memory_space<vmem>>, vector<1x3x256xf32>
    %1 = vector.shape_cast %0 : vector<1x3x256xf32> to vector<3x256xf32>
    %c255_i32 = arith.constant 255 : i32
    %2 = tpu.dynamic_rotate %1 by %c255_i32 dim 1 : vector<3x256xf32>, i32 -> vector<3x256xf32>
    %c254_i32 = arith.constant 254 : i32
    %3 = tpu.dynamic_rotate %1 by %c254_i32 dim 1 : vector<3x256xf32>, i32 -> vector<3x256xf32>
    %c240_i32 = arith.constant 240 : i32
    %4 = tpu.dynamic_rotate %1 by %c240_i32 dim 1 : vector<3x256xf32>, i32 -> vector<3x256xf32>
    %c239_i32 = arith.constant 239 : i32
    %5 = tpu.dynamic_rotate %1 by %c239_i32 dim 1 : vector<3x256xf32>, i32 -> vector<3x256xf32>
    %c238_i32 = arith.constant 238 : i32
    %6 = tpu.dynamic_rotate %1 by %c238_i32 dim 1 : vector<3x256xf32>, i32 -> vector<3x256xf32>
    %c224_i32 = arith.constant 224 : i32
    %7 = tpu.dynamic_rotate %1 by %c224_i32 dim 1 : vector<3x256xf32>, i32 -> vector<3x256xf32>
    %c223_i32 = arith.constant 223 : i32
    %8 = tpu.dynamic_rotate %1 by %c223_i32 dim 1 : vector<3x256xf32>, i32 -> vector<3x256xf32>
    %c222_i32 = arith.constant 222 : i32
    %9 = tpu.dynamic_rotate %1 by %c222_i32 dim 1 : vector<3x256xf32>, i32 -> vector<3x256xf32>
    %10 = tpu.concatenate %1, %2, %3, %4, %5, %6, %7, %8, %9 in 0 : vector<3x256xf32>, vector<3x256xf32>, vector<3x256xf32>, vector<3x256xf32>, vector<3x256xf32>, vector<3x256xf32>, vector<3x256xf32>, vector<3x256xf32>, vector<3x256xf32> -> vector<27x256xf32>
    %c0_2 = arith.constant 0 : index
    %c0_3 = arith.constant 0 : index
    %11 = vector.load %arg2[%c0_2, %c0_3] : memref<6x27xf32, #tpu.memory_space<vmem>>, vector<6x27xf32>
    %cst = arith.constant dense<0.000000e+00> : vector<6x256xf32>
    %12 = tpu.matmul %11, %10, %cst {dimension_numbers = #tpu.dot_dimension_numbers<[1], [0], [0], [1], [0, 0, 1, 1], [], []>} : vector<6x27xf32>, vector<27x256xf32>, vector<6x256xf32> -> vector<6x256xf32>
    %c0_4 = arith.constant 0 : index
    %c0_5 = arith.constant 0 : index
    %13 = vector.load %arg3[%c0_4, %c0_5] : memref<6x1xf32, #tpu.memory_space<vmem>>, vector<6x1xf32>
    %14 = vector.broadcast %13 : vector<6x1xf32> to vector<6x256xf32>
    %15 = arith.addf %12, %14 : vector<6x256xf32>
    %c0_6 = arith.constant 0 : index
    %c0_7 = arith.constant 0 : index
    %c0_8 = arith.constant 0 : index
    %16 = vector.load %arg4[%c0_6, %c0_7, %c0_8] : memref<1x6x256xf32, #tpu.memory_space<vmem>>, vector<1x6x256xf32>
    %17 = vector.shape_cast %16 : vector<1x6x256xf32> to vector<6x256xf32>
    %18 = vector.shape_cast %15 : vector<6x256xf32> to vector<1x6x256xf32>
    tpu.vector_store %arg4[%c0_6, %c0_7, %c0_8], %18 {strides = array<i32>} : memref<1x6x256xf32, #tpu.memory_space<vmem>>, vector<1x6x256xf32>,
    return
  }
  func.func @transform_0(%arg0: i32) -> (i32, i32, i32) {
    %c0_i32 = arith.constant 0 : i32
    %c0_i32_0 = arith.constant 0 : i32
    %c0_i32_1 = arith.constant 0 : i32
    return %arg0, %c0_i32, %c0_i32_0 : i32, i32, i32
  }
  func.func @transform_1(%arg0: i32) -> (i32, i32) {
    %c0_i32 = arith.constant 0 : i32
    %c0_i32_0 = arith.constant 0 : i32
    %c0_i32_1 = arith.constant 0 : i32
    return %c0_i32, %c0_i32_0 : i32, i32
  }
  func.func @transform_2(%arg0: i32) -> (i32, i32) {
    %c0_i32 = arith.constant 0 : i32
    %c0_i32_0 = arith.constant 0 : i32
    %c0_i32_1 = arith.constant 0 : i32
    return %c0_i32, %c0_i32_0 : i32, i32
  }
  func.func @transform_3(%arg0: i32) -> (i32, i32, i32) {
    %c0_i32 = arith.constant 0 : i32
    %c0_i32_0 = arith.constant 0 : i32
    %c0_i32_1 = arith.constant 0 : i32
    return %arg0, %c0_i32, %c0_i32_0 : i32, i32, i32
  }
}

</mosaic_0001>

<bundles_post_ra>
// kernel: tpu_custom_call.1
= control target key start
LH: loop header
LB: loop body
LE: loop exit
PB: predicated region body
PF: predicated region fallthrough
CT: control target
= control target key end

     0   :  { %s515_s12 = smov 0   ;;  %s618_s0 = inlined_call_operand.vmem [shape: f32[2,3,256], index: 0, kind: input, shape index: {}]   ;;  %s619_s1 = inlined_call_operand.vmem [shape: f32[6,27], index: 1, kind: input, shape index: {}]   ;;  %s620_s2 = inlined_call_operand.vmem [shape: f32[6,1], index: 2, kind: input, shape index: {}]   ;;  %s621_s3 = inlined_call_operand.vmem [shape: f32[2,6,256], index: 3, kind: output, shape index: {}]  }
   0x1 LB: > { %s441_s13 = sadd.s32 4294967295, %s483_s12   ;;  %p445_p0 = scmp.ge.s32.totalorder %s483_s12, 1  ;;  %s483_s12 = sphi %s515_s12, %s13_s12  }
   0x2   : > { %p137_p1 = scmp.lt.s32.totalorder %s483_s12, 3 }
   0x4   : > { %p138_p2 = pnand %p445_p0, %p137_p1 }
   0x5   : > { %p161_p3 = scmp.lt.s32.totalorder (!%p138_p2), %s441_s13, 1  ;;  %s485_s18 = smov (!%p138_p2), 96  }
   0x6   : > { %141 = sbr.rel (%p138_p2) target bundleno = 363 (0x16b), region = 32  ;;  %s486_s19 = smov (!%p138_p2), 110  }
   0x7   : > { %s487_s20 = smov (!%p138_p2), 126   ;;  %s488_s21 = smov (!%p138_p2), 112  }
   0x8   : > { %s489_s22 = smov (!%p138_p2), 95   ;;  %s490_s23 = smov (!%p138_p2), 111  }
   0x9   : > { %s493_s24 = smov (!%p138_p2), 94   ;;  %s494_s25 = smov (!%p138_p2), 127  }
   0xb   : > { %s623_s13 = smov (!%p161_p3, %s441_s13), 1  ;;  %v491_v2 = vmov 0.0   ;;  %v492_v3 = vmov 0   ;;  %v297_v4 = vld [vmem:[%s620_s2] sm:$0x3f]  ;;  %v179_v9 = vlaneseq  ;;  %vm290_vm5 = vcmask 1041408  }
   0xc   : > { %s455_s14 = sshll.u32 %s623_s13, 3  ;;  %377 = vmatprep.mubr.f32.mxu0 %v491_v2  ;;  %475 = vset.pattern.permute.xlu0 %v492_v3  ;;  %vm293_vm6 = vcmask 1044480   ;;  %vm281_vm7 = vcmask 1040384   ;;  %vm284_vm10 = vcmask 1043456   ;;  %vm275_vm11 = vcmask 1042432   ;;  %s456_s30 = sshll.u32 %s623_s13, 4 }
   0xd   : > { %s165_s17 = scalar_lea.vmem %s618_s0, %s455_s14  ;;  %v554_v12 = vand.u32 127, %v179_v9  ;;  %vm287_vm12 = vcmask 1046528   ;;  %vm278_vm14 = vcmask 1045504   ;;  %vm303_vm15 = vcmask 220160   ;;  %s170_s6 = scalar_lea.vmem %s621_s3, %s456_s30 }
   0xe   : > { %v529_v0 = vld [vmem:[%s165_s17] sm:$0x77] }
   0xf   : > { %212 = vrot.lane.b32.xlu1 %v529_v0, %s485_s18  ;;  %205 = vrot.lane.b32.xlu0 %v529_v0, %s486_s19  ;;  %v535_v1 = vcombine.high %v529_v0, %v529_v0  ;;  %vm195_vm0 = vcmp.lt.s32.totalorder %v554_v12, 112  ;;  %vm216_vm1 = vcmp.lt.s32.totalorder %v554_v12, 96  ;;  %vm188_vm2 = vcmp.lt.s32.totalorder %v554_v12, 126 }
  0x10   : > { %vm209_vm3 = vcmp.lt.s32.totalorder %v554_v12, 110  ;;  %vm223_vm4 = vcmp.lt.s32.totalorder %v554_v12, 95  ;;  %vm202_vm8 = vcmp.lt.s32.totalorder %v554_v12, 111  ;;  %vm230_vm9 = vcmp.lt.s32.totalorder %v554_v12, 94 }
  0x11   : > { %vm181_vm13 = vcmp.lt.s32.totalorder %v554_v12, 127 }
  0x13   : > { %184 = vrot.lane.b32.xlu0 %v529_v0, %s487_s20  ;;  %214 = vrot.lane.b32.xlu1 %v535_v1, %s485_s18 }
  0x17   : > { %186 = vrot.lane.b32.xlu1 %v535_v1, %s487_s20  ;;  %207 = vrot.lane.b32.xlu0 %v535_v1, %s486_s19 }
  0x1b   : > { %193 = vrot.lane.b32.xlu1 %v535_v1, %s488_s21  ;;  %191 = vrot.lane.b32.xlu0 %v529_v0, %s488_s21 }
  0x1f   : > { %221 = vrot.lane.b32.xlu1 %v535_v1, %s489_s22  ;;  %219 = vrot.lane.b32.xlu0 %v529_v0, %s489_s22 }
  0x23   : > { %200 = vrot.lane.b32.xlu1 %v535_v1, %s490_s23  ;;  %198 = vrot.lane.b32.xlu0 %v529_v0, %s490_s23 }
  0x27   : > { %228 = vrot.lane.b32.xlu1 %v535_v1, %s493_s24  ;;  %226 = vrot.lane.b32.xlu0 %v529_v0, %s493_s24 }
  0x2b   : > { %177 = vrot.lane.b32.xlu1 %v535_v1, %s494_s25  ;;  %175 = vrot.lane.b32.xlu0 %v529_v0, %s494_s25 }
  0x2f   : > { %300 = vperm.xlu0 %475, %v297_v4  }
  0x81   : > { %v213_v5 = vpop.permute.xlu1 %212  ;;  %v206_v6 = vpop.permute.xlu0 %205 }
  0x85   : > { %v185_v7 = vpop.permute.xlu0 %184  ;;  %v215_v8 = vpop.permute.xlu1 %214 }
  0x86   : > { %v218_v18 = vsel %vm216_vm1, %v215_v8, %v213_v5  ;;  %v217_v31 = vsel %vm216_vm1, %v213_v5, %v215_v8  ;;  %v296_v5 = vld [vmem:[%s619_s1] sm:$0x3f] }
  0x87   : > { %v266_v39 = vrot.slane %v218_v18, 6  ;;  %v265_v44 = vrot.slane %v217_v31, 6 }
  0x89   : > { %v187_v10 = vpop.permute.xlu1 %186  ;;  %v208_v11 = vpop.permute.xlu0 %207 }
  0x8a   : > { %v211_v19 = vsel %vm209_vm3, %v208_v11, %v206_v6  ;;  %v189_v21 = vsel %vm188_vm2, %v185_v7, %v187_v10  ;;  %v190_v22 = vsel %vm188_vm2, %v187_v10, %v185_v7  ;;  %v210_v23 = vsel %vm209_vm3, %v206_v6, %v208_v11 }
  0x8b   : > { %v260_v32 = vrot.slane %v211_v19, 1  ;;  %v242_v35 = vrot.slane %v190_v22, 2  ;;  %v259_v36 = vrot.slane %v210_v23, 1  ;;  %v241_v40 = vrot.slane %v189_v21, 2 }
  0x8d   : > { %v194_v13 = vpop.permute.xlu1 %193  ;;  %v192_v14 = vpop.permute.xlu0 %191  ;;  %v292_v48 = vsel %vm290_vm5, %v260_v32, %v266_v39  ;;  %v291_v52 = vsel %vm290_vm5, %v259_v36, %v265_v44 }
  0x8e   : > { %v197_v17 = vsel %vm195_vm0, %v194_v13, %v192_v14  ;;  %v196_v20 = vsel %vm195_vm0, %v192_v14, %v194_v13 }
  0x8f   : > { %v248_v27 = vrot.slane %v197_v17, 7  ;;  %v247_v33 = vrot.slane %v196_v20, 7 }
  0x91   : > { %v222_v15 = vpop.permute.xlu1 %221  ;;  %v220_v16 = vpop.permute.xlu0 %219  ;;  %v283_v47 = vsel %vm281_vm7, %v242_v35, %v248_v27  ;;  %v282_v50 = vsel %vm281_vm7, %v241_v40, %v247_v33 }
  0x92   : > { %v225_v24 = vsel %vm223_vm4, %v222_v15, %v220_v16  ;;  %v224_v28 = vsel %vm223_vm4, %v220_v16, %v222_v15 }
  0x93   : > { %v272_v37 = vrot.slane %v225_v24, 3  ;;  %v271_v41 = vrot.slane %v224_v28, 3 }
  0x95   : > { %v201_v25 = vpop.permute.xlu1 %200  ;;  %v199_v26 = vpop.permute.xlu0 %198  ;;  %v295_v51 = vsel %vm293_vm6, %v292_v48, %v272_v37  ;;  %v294_v56 = vsel %vm293_vm6, %v291_v52, %v271_v41 }
  0x96   : > { %v203_v29 = vsel %vm202_vm8, %v199_v26, %v201_v25  ;;  %v204_v30 = vsel %vm202_vm8, %v201_v25, %v199_v26 }
  0x97   : > { %v254_v34 = vrot.slane %v204_v30, 4  ;;  %v253_v38 = vrot.slane %v203_v29, 4 }
  0x99   : > { %v229_v42 = vpop.permute.xlu1 %228  ;;  %v227_v43 = vpop.permute.xlu0 %226  ;;  %v286_v49 = vsel %vm284_vm10, %v283_v47, %v254_v34  ;;  %v285_v53 = vsel %vm284_vm10, %v282_v50, %v253_v38 }
  0x9a   : > { %v232_v45 = vsel %vm230_vm9, %v229_v42, %v227_v43  ;;  %v231_v46 = vsel %vm230_vm9, %v227_v43, %v229_v42  ;;  %v289_v59 = vsel %vm287_vm12, %v286_v49, %v260_v32  ;;  %v288_v62 = vsel %vm287_vm12, %v285_v53, %v259_v36 }
  0x9b   : > { %450 = vmatprep.subr.msk.mxu0 %vm275_vm11, %v232_v45 }
  0x9c   : > { %451 = vmatpush1.msk.msra.mxu0 %vm275_vm11, %v231_v46 }
  0x9d   : > { %v178_v54 = vpop.permute.xlu1 %177  ;;  %339 = vmatprep.subr.mxu0 %v295_v51  ;;  %v176_v55 = vpop.permute.xlu0 %175 }
  0x9e   : > { %v182_v57 = vsel %vm181_vm13, %v176_v55, %v178_v54  ;;  %v183_v58 = vsel %vm181_vm13, %v178_v54, %v176_v55  ;;  %340 = vmatpush1.msra.mxu0 %v294_v56 }
  0x9f   : > { %v235_v60 = vrot.slane %v182_v57, 5  ;;  %v236_v61 = vrot.slane %v183_v58, 5  ;;  %341 = vmatprep.subr.mxu0 %v289_v59 }
  0xa0   : > { %342 = vmatpush1.msra.mxu0 %v288_v62 }
  0xa1   : > { %v277_v63 = vsel %vm275_vm11, %v535_v1, %v236_v61  ;;  %v276_v2 = vsel %vm275_vm11, %v529_v0, %v235_v60 }
  0xa2   : > { %v280_v3 = vsel %vm278_vm14, %v277_v63, %v242_v35  ;;  %v279_v4 = vsel %vm278_vm14, %v276_v2, %v241_v40 }
  0xa3   : > { %343 = vmatprep.subr.mxu0 %v280_v3 }
  0xa4   : > { %344 = vmatpush1.msra.mxu0 %v279_v4 }
  0xa5   : > { %452 = vmatmul.mubr.msk.f32.vlgmr.msra.gmra.mxu0 %vm303_vm15, %v296_v5 }
  0xaa   : > { %v301_v6 = vpop.permute.xlu0 %300 }
 0x165   : > { %v379_v7 = vpop.f32.mrf.mxu0 }
 0x166   : > { %v380_v1 = vadd.f32 %v379_v7, %v301_v6 }
 0x167   : > { %v381_v8 = vpop.f32.mrf.mxu0 }
 0x168   : > { %384 = vst [vmem:[%s170_s6] sm:$0x3f] %v380_v1  ;;  %v382_v0 = vadd.f32 %v381_v8, %v301_v6 }
 0x16a   : > { %385 = vst [vmem:[%s170_s6 + $0x8] sm:$0x3f] %v382_v0 }
 0x16b PF: > { %s13_s12 = sadd.s32 1, %s483_s12  }
 0x16c   : > { %p10_p4 = scmp.ge.s32.totalorder %s13_s12, 4  }
 0x16e   :  { %12 = sbr.rel (!%p10_p4) target bundleno = 1 (0x1), region = 62 }

</bundles_post_ra>
